<compile_context>
chip_gen: v5e
topology: v5e:2x2
jax: 0.10.0
libtpu: 0.0.40
codegen_flags: <defaults>
</compile_context>

<pallas_src>
import jax
import jax.numpy as jnp
from jax.experimental import pallas as pl
from jax.experimental.pallas import tpu as pltpu


def embed_kernel(patches_ref, w_ref, add_ref, out_ref):
    # patches_ref: (TM, K)      bf16   (row 0 of the full array is the zero cls slot)
    # w_ref:       (K, hidden)  bf16   (resident across all grid steps)
    # add_ref:     (TM, hidden) f32    (pos + conv_bias; cls row holds cls + pos[0];
    #                                   reused across the inner batch axis)
    # out_ref:     (TM, hidden) out_dtype (bf16 by default)
    y = jnp.dot(patches_ref[...], w_ref[...], preferred_element_type=jnp.float32)
    # f32 epilogue (v5e has no bf16 VPU); bias / cls already folded into add_ref.
    out_ref[...] = (y + add_ref[...]).astype(out_ref.dtype)


def _round_up(x: int, m: int) -> int:
    return ((x + m - 1) // m) * m


def _choose_token_tile(n_tok: int, K: int, hidden: int, batch: int,
                       *, in_bytes: int = 2, add_bytes: int = 4,
                       out_bytes: int = 2, vmem_budget: int = 24 << 20) -> int:
    """TM = round_up(cdiv(n_tok, n_tiles), 8) for the smallest n_tiles whose VMEM
    footprint fits the budget.  Prefers one whole-extent tile (amortizes the
    ~0.35us/step overhead, no partial-tail MXU/DMA waste); when batch == 1 it keeps
    a >= 2-way split of the token axis so both v7x TensorCores get work."""
    min_tiles = 1 if batch >= 2 else 2
    n_tiles = min_tiles
    while True:
        if n_tiles == 1:
            tm = n_tok                      # full extent: always a legal block
        else:
            tm = _round_up(pl.cdiv(n_tok, n_tiles), 8)
            if tm >= n_tok:                 # cannot split into that many legal tiles
                tm = n_tok
        # double-buffered patch/out tiles + resident bf16 weight + reused add tile
        footprint = (2 * tm * K * in_bytes + K * hidden * 2
                     + 2 * tm * hidden * add_bytes + 2 * tm * hidden * out_bytes)
        if footprint <= vmem_budget or tm <= 8 or n_tiles >= n_tok:
            return tm
        n_tiles += 1


def embeddings_forward(x, conv_w, conv_b, cls_token, pos_emb, patch_size,
                       out_dtype=jnp.bfloat16):
    """Forward pass of Embeddings.

    x:         (B, C, H, W)            float32, NCHW
    conv_w:    (hidden, C, Ph, Pw)     Conv2d weight (OIHW)
    conv_b:    (hidden,)               Conv2d bias
    cls_token: (1, 1, hidden)
    pos_emb:   (1, n_patches+1, hidden)
    returns:   (B, n_patches+1, hidden) in out_dtype (bf16 by default — the output
               is the largest HBM stream; pass f32 to match PyTorch exactly).
    """
    B, C, H, W = x.shape
    Ph, Pw = patch_size
    gh, gw = H // Ph, W // Pw
    n_patches = gh * gw
    hidden = conv_w.shape[0]
    K = C * Ph * Pw
    n_tok = n_patches + 1

    # Glue (XLA side): bf16 cast -> non-overlapping patch extraction in (c, ph, pw)
    # order (matches the OIHW weight flattening) -> front-pad one zero token row for
    # the cls slot (0 @ W == 0; cls value + pos[0] come from add_term).  Written as
    # one chain so XLA can fuse cast/transpose/pad into a single copy.
    patches_tok = jnp.pad(
        x.astype(jnp.bfloat16)
        .reshape(B, C, gh, Ph, gw, Pw)
        .transpose(0, 2, 4, 1, 3, 5)
        .reshape(B, n_patches, K),
        ((0, 0), (1, 0), (0, 0)),
    )                                                               # (B, n_tok, K) bf16

    # NOTE(v6e): for non-standard widths keep K / hidden multiples of 256 (pad the
    # weight once in the wrapper) to keep the 2x256^2 MXU full; ViT-Base 768/768 is
    # already aligned.
    w_mat = conv_w.reshape(hidden, K).T.astype(jnp.bfloat16)        # (K, hidden)

    # Fused additive epilogue term, kept f32:
    #   row 0      = cls_token + pos[0]
    #   rows 1..n  = pos[1:]   + conv_bias
    add_term = jnp.concatenate(
        [cls_token.reshape(1, hidden) + pos_emb[0, :1, :],
         pos_emb[0, 1:, :] + conv_b[None, :]],
        axis=0,
    ).astype(jnp.float32)                                           # (n_tok, hidden)

    TM = _choose_token_tile(n_tok, K, hidden, B)
    num_m = pl.cdiv(n_tok, TM)
    grid = (num_m, B)   # token axis OUTERMOST: add/weight blocks reused across batch

    out = pl.pallas_call(
        embed_kernel,
        out_shape=jax.ShapeDtypeStruct((B, n_tok, hidden), out_dtype),
        grid_spec=pltpu.PrefetchScalarGridSpec(
            num_scalar_prefetch=0,
            grid=grid,
            in_specs=[
                # Batch dim squeezed (None) -> clean 2D tiles in the kernel body.
                pl.BlockSpec((None, TM, K), lambda m, b: (b, m, 0)),
                pl.BlockSpec((K, hidden), lambda m, b: (0, 0)),       # resident
                pl.BlockSpec((TM, hidden), lambda m, b: (m, 0)),      # reused over b
            ],
            out_specs=pl.BlockSpec((None, TM, hidden), lambda m, b: (b, m, 0)),
        ),
        compiler_params=pltpu.CompilerParams(
            # Every (m, b) step writes a distinct output block -> fully parallel;
            # lets v7x shard the grid across both TensorCores.
            dimension_semantics=("parallel", "parallel"),
        ),
    )(patches_tok, w_mat, add_term)
    return out


if __name__ == "__main__":
    # Small shapes consistent with the module:
    B, C = 2, 4
    H = W = 16
    Ph = Pw = 4
    hidden = 32
    n_patches = (H // Ph) * (W // Pw)  # 16

    key = jax.random.PRNGKey(0)
    k0, k1, k2, k3, k4 = jax.random.split(key, 5)

    x = jax.random.normal(k0, (B, C, H, W), dtype=jnp.float32)
    # Note: PyTorch inits cls_token / position_embeddings to zeros; here we use
    # deterministic random values so the test exercises all terms.
    conv_w = 0.05 * jax.random.normal(k1, (hidden, C, Ph, Pw), dtype=jnp.float32)
    conv_b = 0.05 * jax.random.normal(k2, (hidden,), dtype=jnp.float32)
    cls_token = 0.05 * jax.random.normal(k3, (1, 1, hidden), dtype=jnp.float32)
    pos_emb = 0.05 * jax.random.normal(k4, (1, n_patches + 1, hidden), dtype=jnp.float32)

    out = embeddings_forward(x, conv_w, conv_b, cls_token, pos_emb, (Ph, Pw))
    out = jax.block_until_ready(out)

    # Independent reference using XLA's conv (NCHW / OIHW), mirroring the PyTorch
    # forward.  Inputs rounded to bf16 to match the kernel's matmul precision
    # (accumulation is f32 in both paths).
    x_q = x.astype(jnp.bfloat16).astype(jnp.float32)
    w_q = conv_w.astype(jnp.bfloat16).astype(jnp.float32)
    conv_out = jax.lax.conv_general_dilated(
        x_q, w_q, window_strides=(Ph, Pw), padding="VALID",
        dimension_numbers=("NCHW", "OIHW", "NCHW"),
        precision=jax.lax.Precision.HIGHEST,
    ) + conv_b[None, :, None, None]
    ref = conv_out.reshape(B, hidden, n_patches).transpose(0, 2, 1)
    ref = jnp.concatenate([jnp.broadcast_to(cls_token, (B, 1, hidden)), ref], axis=1)
    ref = ref + pos_emb  # dropout is identity in eval mode

    assert out.shape == (B, n_patches + 1, hidden)
    assert out.dtype == jnp.bfloat16
    max_diff = float(jnp.max(jnp.abs(out.astype(jnp.float32) - ref)))
    # Output is bf16 by default -> tolerance covers one bf16 ulp at |v| ~ 1.5.
    assert max_diff < 3e-2, f"mismatch vs reference, max abs diff = {max_diff}"
    print("KERNEL_OK")
</pallas_src>

<mosaic_0001>
module attributes {stable_mosaic.version = 11 : i64} {
  func.func @embed_kernel(%arg0: i32, %arg1: i32, %arg2: memref<1x17x64xbf16, #tpu.memory_space<vmem>>, %arg3: memref<64x32xbf16, #tpu.memory_space<vmem>>, %arg4: memref<17x32xf32, #tpu.memory_space<vmem>>, %arg5: memref<1x17x32xbf16, #tpu.memory_space<vmem>>) attributes {dimension_semantics = [#tpu.dimension_semantics<parallel>, #tpu.dimension_semantics<parallel>], iteration_bounds = array<i64: 1, 2>, scalar_prefetch = 0 : i64, scratch_operands = 0 : i64, tpu.core_type = #tpu.core_type<tc>, window_params = [{transform_indices = @transform_0, window_bounds = array<i64: 1, 17, 64>}, {pipeline_mode = #tpu.pipeline_mode<synchronous>, transform_indices = @transform_1, window_bounds = array<i64: 64, 32>}, {transform_indices = @transform_2, window_bounds = array<i64: 17, 32>}, {transform_indices = @transform_3, window_bounds = array<i64: 1, 17, 32>}]} {
    %c0 = arith.constant 0 : index
    %c0_0 = arith.constant 0 : index
    %c0_1 = arith.constant 0 : index
    %0 = vector.load %arg2[%c0, %c0_0, %c0_1] : memref<1x17x64xbf16, #tpu.memory_space<vmem>>, vector<1x17x64xbf16>
    %1 = vector.shape_cast %0 : vector<1x17x64xbf16> to vector<17x64xbf16>
    %c0_2 = arith.constant 0 : index
    %c0_3 = arith.constant 0 : index
    %2 = vector.load %arg3[%c0_2, %c0_3] : memref<64x32xbf16, #tpu.memory_space<vmem>>, vector<64x32xbf16>
    %cst = arith.constant dense<0.000000e+00> : vector<17x32xf32>
    %3 = tpu.matmul %1, %2, %cst {dimension_numbers = #tpu.dot_dimension_numbers<[1], [0], [0], [1], [0, 0, 1, 1], [], []>} : vector<17x64xbf16>, vector<64x32xbf16>, vector<17x32xf32> -> vector<17x32xf32>
    %c0_4 = arith.constant 0 : index
    %c0_5 = arith.constant 0 : index
    %4 = vector.load %arg4[%c0_4, %c0_5] : memref<17x32xf32, #tpu.memory_space<vmem>>, vector<17x32xf32>
    %5 = arith.addf %3, %4 : vector<17x32xf32>
    %6 = arith.truncf %5 : vector<17x32xf32> to vector<17x32xbf16>
    %c0_6 = arith.constant 0 : index
    %c0_7 = arith.constant 0 : index
    %c0_8 = arith.constant 0 : index
    %7 = vector.load %arg5[%c0_6, %c0_7, %c0_8] : memref<1x17x32xbf16, #tpu.memory_space<vmem>>, vector<1x17x32xbf16>
    %8 = vector.shape_cast %7 : vector<1x17x32xbf16> to vector<17x32xbf16>
    %9 = vector.shape_cast %6 : vector<17x32xbf16> to vector<1x17x32xbf16>
    tpu.vector_store %arg5[%c0_6, %c0_7, %c0_8], %9 {strides = array<i32>} : memref<1x17x32xbf16, #tpu.memory_space<vmem>>, vector<1x17x32xbf16>,
    return
  }
  func.func @transform_0(%arg0: i32, %arg1: i32) -> (i32, i32, i32) {
    %c0_i32 = arith.constant 0 : i32
    %c0_i32_0 = arith.constant 0 : i32
    return %arg1, %arg0, %c0_i32 : i32, i32, i32
  }
  func.func @transform_1(%arg0: i32, %arg1: i32) -> (i32, i32) {
    %c0_i32 = arith.constant 0 : i32
    %c0_i32_0 = arith.constant 0 : i32
    %c0_i32_1 = arith.constant 0 : i32
    return %c0_i32, %c0_i32_0 : i32, i32
  }
  func.func @transform_2(%arg0: i32, %arg1: i32) -> (i32, i32) {
    %c0_i32 = arith.constant 0 : i32
    %c0_i32_0 = arith.constant 0 : i32
    return %arg0, %c0_i32 : i32, i32
  }
  func.func @transform_3(%arg0: i32, %arg1: i32) -> (i32, i32, i32) {
    %c0_i32 = arith.constant 0 : i32
    %c0_i32_0 = arith.constant 0 : i32
    return %arg1, %arg0, %c0_i32 : i32, i32, i32
  }
}

</mosaic_0001>

<bundles_post_ra>
// kernel: tpu_custom_call.1
= control target key start
LH: loop header
LB: loop body
LE: loop exit
PB: predicated region body
PF: predicated region fallthrough
CT: control target
= control target key end

     0   :  { %s528_s12 = smov 0   ;;  %s530_s13 = smov 0   ;;  %s582_s0 = inlined_call_operand.vmem [shape: bf16[2,17,64], index: 0, kind: input, shape index: {}]   ;;  %s583_s1 = inlined_call_operand.vmem [shape: bf16[64,32], index: 1, kind: input, shape index: {}]   ;;  %s584_s2 = inlined_call_operand.vmem [shape: f32[17,32], index: 2, kind: input, shape index: {}]   ;;  %s585_s3 = inlined_call_operand.vmem [shape: bf16[2,17,32], index: 3, kind: output, shape index: {}]  }
   0x1   :  { %s532_s14 = smov 0  }
   0x2 LB: > { %s22_s15 = sadd.s32 1, %s502_s13  ;;  %p423_p0 = scmp.ge.s32.totalorder %s506_s14, 1  ;;  %s506_s14 = sphi %s532_s14, %s13_s14   ;;  %s502_s13 = sphi %s530_s13, %s587_s13   ;;  %s498_s12 = sphi %s528_s12, %s586_s12  }
   0x3   : > { %p23_p1 = scmp.ge.s32.totalorder %s22_s15, 2  ;;  %p169_p2 = scmp.lt.s32.totalorder %s506_s14, 3 }
   0x5   : > { %s589_s15 = smov (%p23_p1, %s22_s15), 0  ;;  %p170_p3 = pnand %p423_p0, %p169_p2 }
   0x6   : > { %p207_p4 = scmp.lt.s32.totalorder (!%p170_p3), %s498_s12, 1 }
   0x7   : > { %173 = sbr.rel (%p170_p3) target bundleno = 167 (0xa7), region = 32 }
   0xc   : > { %v454_v0 = vld [vmem:[%s583_s1 + $0x18] sm:$0xff]  ;;  %v453_v1 = vld [vmem:[%s583_s1 + $0x10] sm:$0xff]  ;;  %s591_s12 = smov (!%p207_p4, %s498_s12), 1  ;;  %v452_v2 = vld [vmem:[%s583_s1 + $0x8] sm:$0xff]  ;;  %vm279_vm0 = vcmask 523264   ;;  %vm310_vm1 = vcmask 253952  }
   0xd   : > { %290 = vmatpush.bf16.msra.mxu0 %v454_v0  ;;  %455 = vmatpush.bf16.msra.mxu1 %v454_v0  ;;  %s459_s20 = smul.u32 12, %s591_s12  ;;  %v451_v5 = vld [vmem:[%s583_s1] sm:$0xff]  ;;  %v246_v9 = vld [vmem:[%s584_s2 + $0x10] sm:$0x1]  ;;  %vm311_vm2 = vsmask.f32 256 }
   0xe   : > { %v244_v8 = vld [vmem:[%s584_s2] sm:$0xff]  ;;  %vm307_vm3 = vcmask 257024   ;;  %vm312_vm4 = vmand %vm310_vm1, %vm311_vm2  ;;  %v245_v18 = vld [vmem:[%s584_s2 + $0x8] sm:$0xff] }
   0xf   : > { %s214_s25 = scalar_lea.vmem %s582_s0, %s459_s20  ;;  %s230_s7 = scalar_lea.vmem %s585_s3, %s459_s20 }
  0x10   : > { %v235_v3 = vld [vmem:[%s214_s25 + $0x8] sm:$0x1]  ;;  %v450_v6 = vld [vmem:[%s214_s25] sm:$0xff] }
  0x11   : > { %291 = vmatpush.bf16.msra.mxu0 %v453_v1  ;;  %456 = vmatpush.bf16.msra.mxu1 %v453_v1  ;;  %v252_v4 = vunpack.c.l.b16 %v235_v3  ;;  %v313_v14 = vld [vmem:[%s230_s7 + $0x8] sm:$0x1] }
  0x13   : > { %v254_v7 = vpack.c.b16 %v252_v4, %v252_v4 }
  0x15   : > { %292 = vmatpush.bf16.msra.mxu0 %v452_v2  ;;  %457 = vmatpush.bf16.msra.mxu1 %v452_v2 }
  0x19   : > { %293 = vmatpush.bf16.msra.mxu0 %v451_v5  ;;  %458 = vmatpush.bf16.msra.mxu1 %v451_v5 }
  0x1c   : > { %446 = vmatmul.msk.bf16.vlgmr.msra.gmra.mxu0 %vm279_vm0, %v450_v6  ;;  %447 = vmatmul.msk.bf16.vlgmr.msra.gmra.mxu1 %vm279_vm0, %v254_v7 }
  0x99   : > { %v295_v10 = vpop.f32.mrf.mxu0  ;;  %v300_v11 = vpop.f32.mrf.mxu1 }
  0x9a   : > { %v296_v12 = vadd.f32 %v295_v10, %v244_v8  ;;  %v301_v13 = vadd.f32 %v300_v11, %v246_v9 }
  0x9c   : > { %v304_v15 = vpack.c.bf16 %v296_v12, %v296_v12  ;;  %v306_v16 = vpack.c.bf16 %v301_v13, %v301_v13 }
  0x9e   : > { %308 = vst.msk [vmem:[%s230_s7] sm:$0xf] %vm307_vm3, %v304_v15  ;;  %v314_v17 = vsel %vm312_vm4, %v306_v16, %v313_v14 }
  0x9f   : > { %315 = vst [vmem:[%s230_s7 + $0x8] sm:$0x1] %v314_v17 }
  0xa1   : > { %v297_v19 = vpop.f32.mrf.mxu0  ;;  %v302_v20 = vpop.f32.mrf.mxu1 }
  0xa2   : > { %v298_v21 = vadd.f32 %v297_v19, %v245_v18 }
  0xa4   : > { %v305_v22 = vpack.c.bf16 %v298_v21, %v298_v21 }
  0xa6   : > { %309 = vst.msk [vmem:[%s230_s7 + $0x4] sm:$0xf] %vm307_vm3, %v305_v22 }
  0xa7 PF: > { %s13_s14 = sadd.s32 1, %s506_s14   ;;  %s586_s12 = smov %s502_s13 }
  0xa8   : > { %p10_p5 = scmp.ge.s32.totalorder %s13_s14, 4   ;;  %s587_s13 = smov %s589_s15 }
  0xaa   :  { %12 = sbr.rel (!%p10_p5) target bundleno = 2 (0x2), region = 65 }

</bundles_post_ra>
